<compile_context>
chip_gen: v7x
topology: tpu7x:2x2x1
jax: 0.10.0
libtpu: 0.0.40
codegen_flags: <defaults>
</compile_context>

<pallas_src>
import numpy as np
import jax
import jax.numpy as jnp
from jax.experimental import pallas as pl
from jax.experimental.pallas import tpu as pltpu

# Fixed, non-trainable differentiation kernels from DifferNet.__init__.
_DIFFER_KX = (1.0 / 5.0) * np.array(
    [[-0.0625, -0.125, 0.0, 0.125, 0.0625],
     [-0.125,  -0.25,  0.0, 0.25,  0.125],
     [-0.25,   -0.5,   0.0, 0.5,   0.25],
     [-0.125,  -0.25,  0.0, 0.25,  0.125],
     [-0.0625, -0.125, 0.0, 0.125, 0.0625]], dtype=np.float32)
_DIFFER_KY = np.ascontiguousarray(_DIFFER_KX.T)  # y-kernel is the transpose

# Separable factorisation: _DIFFER_KX == (1/5) * outer(_SMOOTH, _DERIV).
_SMOOTH = np.array([0.25, 0.5, 1.0, 0.5, 0.25], dtype=np.float32)
_DERIV = np.array([-0.25, -0.5, 0.0, 0.5, 0.25], dtype=np.float32)


def _differ_kernel(top_ref, main_ref, bot_ref, o_ref, ext_ref):
    # top_ref / bot_ref: (1, 2, HB, W)  halo slabs (only 2 rows of each used)
    # main_ref:          (1, 2, TH, W)  current row tile of both channels
    # o_ref:             (1, 4, TH, W)  output channels [exx, exy, eyx, eyy]
    # ext_ref:           (2, TH+4, W+4) zero-bordered assembly scratch (VMEM)
    TH = o_ref.shape[2]
    W = o_ref.shape[3]
    HB = top_ref.shape[2]

    t = pl.program_id(1)
    nt = pl.num_programs(1)

    # --- assemble the zero-padded (TH+4, W+4) slab for both channels -------
    # Left/right 2-column borders: rewritten with zeros every step (cheap, and
    # keeps every grid step fully independent of execution order / core).
    zcols = jnp.zeros((2, TH + 4, 2), jnp.float32)
    ext_ref[:, :, 0:2] = zcols
    ext_ref[:, :, W + 2:W + 4] = zcols

    for c in range(2):
        ext_ref[c, 2:TH + 2, 2:W + 2] = main_ref[0, c, :, :]

    zrows = jnp.zeros((2, W), jnp.float32)

    @pl.when(t > 0)                       # top halo = last 2 rows of tile t-1
    def _():
        for c in range(2):
            ext_ref[c, 0:2, 2:W + 2] = top_ref[0, c, HB - 2:HB, :]

    @pl.when(t == 0)                      # image border -> zero padding
    def _():
        for c in range(2):
            ext_ref[c, 0:2, 2:W + 2] = zrows

    @pl.when(t < nt - 1)                  # bottom halo = first 2 rows of t+1
    def _():
        for c in range(2):
            ext_ref[c, TH + 2:TH + 4, 2:W + 2] = bot_ref[0, c, 0:2, :]

    @pl.when(t == nt - 1)                 # image border -> zero padding
    def _():
        for c in range(2):
            ext_ref[c, TH + 2:TH + 4, 2:W + 2] = zrows

    # --- separable 5x5 stencils ---------------------------------------------
    # TODO(synk): for very large H,W a banded-matmul (MXU) formulation of the
    # two 1-D passes could offload this from the VPU on v6e/v7x.
    for c in range(2):
        # Five lane-shifted column views, computed once, shared by both
        # horizontal passes (zeros at the image borders come from the scratch).
        l2 = ext_ref[c, :, 0:W]
        l1 = ext_ref[c, :, 1:W + 1]
        cc = ext_ref[c, :, 2:W + 2]
        r1 = ext_ref[c, :, 3:W + 3]
        r2 = ext_ref[c, :, 4:W + 4]
        # Horizontal derivative (taps d) / horizontal smooth (taps s).
        hd = 0.25 * (r2 - l2) + 0.5 * (r1 - l1)      # (TH+4, W)
        hs = cc + 0.5 * (l1 + r1) + 0.25 * (l2 + r2)  # (TH+4, W)
        # Vertical smooth / vertical derivative with the global 1/5 folded in:
        #   s/5 = [.05, .1, .2, .1, .05],  d/5 = [-.05, -.1, 0, .1, .05]
        e_x = (0.2 * hd[2:TH + 2, :]
               + 0.1 * (hd[1:TH + 1, :] + hd[3:TH + 3, :])
               + 0.05 * (hd[0:TH, :] + hd[4:TH + 4, :]))
        e_y = (0.1 * (hs[3:TH + 3, :] - hs[1:TH + 1, :])
               + 0.05 * (hs[4:TH + 4, :] - hs[0:TH, :]))
        o_ref[0, 2 * c + 0] = e_x         # c==0: exx,  c==1: eyx
        o_ref[0, 2 * c + 1] = e_y         # c==0: exy,  c==1: eyy


def _pick_tile_h(H, tile_h=None, cap=128):
    """Pick a row-tile height: a multiple-of-8 divisor of H (or H itself)."""
    if tile_h is not None:
        if H % tile_h != 0 or not (tile_h % 8 == 0 or tile_h == H):
            raise ValueError(
                "tile_h must divide H and be a multiple of 8 (or equal H)")
        return tile_h
    if H <= cap or H % 8 != 0:
        # TODO(synk): H not a multiple of 8 and larger than the cap falls back
        # to a single whole-image tile (per-step VMEM then grows with H*W).
        return H
    best = 8
    for th in range(8, cap + 1, 8):
        if H % th == 0:
            best = th
    return best


def differ_net_forward(displacements, *, tile_h=None):
    """Equivalent of DifferNet.forward(displacements, with_net=False).

    displacements: (B, 2, H, W), NCHW.
    returns: (B, 4, H, W) float32, channels [exx, exy, eyx, eyy].
    """
    B, C, H, W = displacements.shape
    if C != 2:
        raise ValueError("DifferNet expects 2 displacement channels")
    if H < 2:
        raise ValueError("H must be >= 2")
    x = displacements.astype(jnp.float32)

    TH = _pick_tile_h(H, tile_h)
    T = H // TH
    # Halo slabs are fetched as 8-row blocks when that tiles H evenly; in the
    # untiled fallback they are whole-H blocks (their content is masked off at
    # the image borders anyway).
    HB = 8 if (H % 8 == 0 and TH % 8 == 0) else H
    R = TH // HB                      # halo-block stride per row tile (>= 1)
    n_hb = max(H // HB, 1)            # number of halo blocks along H

    top_spec = pl.BlockSpec(
        (1, 2, HB, W), lambda b, t: (b, 0, jnp.maximum(t * R - 1, 0), 0))
    main_spec = pl.BlockSpec((1, 2, TH, W), lambda b, t: (b, 0, t, 0))
    bot_spec = pl.BlockSpec(
        (1, 2, HB, W), lambda b, t: (b, 0, jnp.minimum((t + 1) * R, n_hb - 1), 0))
    out_spec = pl.BlockSpec((1, 4, TH, W), lambda b, t: (b, 0, t, 0))

    # TODO(synk): for very small W (< 128) the output stores are lane-masked;
    # folding W into the lane dimension would need a wrap-aware stencil and is
    # not worth it at those sizes.
    return pl.pallas_call(
        _differ_kernel,
        out_shape=jax.ShapeDtypeStruct((B, 4, H, W), jnp.float32),
        grid=(B, T),
        in_specs=[top_spec, main_spec, bot_spec],
        out_specs=out_spec,
        scratch_shapes=[pltpu.VMEM((2, TH + 4, W + 4), jnp.float32)],
        compiler_params=pltpu.CompilerParams(
            dimension_semantics=("parallel", "parallel"),
            vmem_limit_bytes=48 * 1024 * 1024),
    )(x, x, x)


def _reference(displacements):
    """Pure-JAX reference of the same forward pass (for verification)."""
    kx = jnp.asarray(_DIFFER_KX)[None, None]  # (1,1,5,5) OIHW
    ky = jnp.asarray(_DIFFER_KY)[None, None]
    disp_x = displacements[:, 0:1].astype(jnp.float32)
    disp_y = displacements[:, 1:2].astype(jnp.float32)

    def conv(inp, w):
        return jax.lax.conv_general_dilated(
            inp, w, window_strides=(1, 1), padding=((2, 2), (2, 2)),
            dimension_numbers=("NCHW", "OIHW", "NCHW"))

    return jnp.concatenate(
        [conv(disp_x, kx), conv(disp_x, ky), conv(disp_y, kx), conv(disp_y, ky)],
        axis=1)


if __name__ == "__main__":
    # Sanity: the separable factorisation reproduces the PyTorch constants.
    np.testing.assert_array_equal(
        (1.0 / 5.0) * np.outer(_SMOOTH, _DERIV), _DIFFER_KX)

    key = jax.random.PRNGKey(0)
    displacements = jax.random.normal(key, (2, 2, 16, 16), dtype=jnp.float32)

    out = jax.block_until_ready(differ_net_forward(displacements))
    assert out.shape == (2, 4, 16, 16), out.shape
    ref = jax.block_until_ready(_reference(displacements))
    np.testing.assert_allclose(np.asarray(out), np.asarray(ref),
                               rtol=1e-4, atol=1e-5)

    # Exercise the row-tiled + halo path explicitly (H=32 split into 8-row tiles).
    disp2 = jax.random.normal(jax.random.PRNGKey(0), (2, 2, 32, 32),
                              dtype=jnp.float32)
    out2 = jax.block_until_ready(differ_net_forward(disp2, tile_h=8))
    ref2 = jax.block_until_ready(_reference(disp2))
    np.testing.assert_allclose(np.asarray(out2), np.asarray(ref2),
                               rtol=1e-4, atol=1e-5)

    print("KERNEL_OK")
</pallas_src>

<mosaic_0001>
module attributes {stable_mosaic.version = 11 : i64} {
  func.func @_differ_kernel(%arg0: i32, %arg1: i32, %arg2: memref<1x2x8x16xf32, #tpu.memory_space<vmem>>, %arg3: memref<1x2x16x16xf32, #tpu.memory_space<vmem>>, %arg4: memref<1x2x8x16xf32, #tpu.memory_space<vmem>>, %arg5: memref<1x4x16x16xf32, #tpu.memory_space<vmem>>, %arg6: memref<2x20x20xf32, #tpu.memory_space<vmem>>) attributes {dimension_semantics = [#tpu.dimension_semantics<parallel>, #tpu.dimension_semantics<parallel>], iteration_bounds = array<i64: 2, 1>, scalar_prefetch = 0 : i64, scratch_operands = 1 : i64, tpu.core_type = #tpu.core_type<tc>, window_params = [{transform_indices = @transform_0, window_bounds = array<i64: 1, 2, 8, 16>}, {transform_indices = @transform_1, window_bounds = array<i64: 1, 2, 16, 16>}, {transform_indices = @transform_2, window_bounds = array<i64: 1, 2, 8, 16>}, {transform_indices = @transform_3, window_bounds = array<i64: 1, 4, 16, 16>}]} {
    %cst = arith.constant 0.000000e+00 : f32
    %0 = vector.broadcast %cst : f32 to vector<2x20x2xf32>
    %c0 = arith.constant 0 : index
    %c0_0 = arith.constant 0 : index
    %c0_1 = arith.constant 0 : index
    %1 = vector.load %arg6[%c0, %c0_0, %c0_1] : memref<2x20x20xf32, #tpu.memory_space<vmem>>, vector<2x20x2xf32>
    tpu.vector_store %arg6[%c0, %c0_0, %c0_1], %0 {strides = array<i32>} : memref<2x20x20xf32, #tpu.memory_space<vmem>>, vector<2x20x2xf32>,
    %c0_2 = arith.constant 0 : index
    %c0_3 = arith.constant 0 : index
    %c18 = arith.constant 18 : index
    %2 = vector.load %arg6[%c0_2, %c0_3, %c18] : memref<2x20x20xf32, #tpu.memory_space<vmem>>, vector<2x20x2xf32>
    tpu.vector_store %arg6[%c0_2, %c0_3, %c18], %0 {strides = array<i32>} : memref<2x20x20xf32, #tpu.memory_space<vmem>>, vector<2x20x2xf32>,
    %c0_4 = arith.constant 0 : index
    %c0_5 = arith.constant 0 : index
    %c0_6 = arith.constant 0 : index
    %c0_7 = arith.constant 0 : index
    %3 = vector.load %arg3[%c0_4, %c0_5, %c0_6, %c0_7] : memref<1x2x16x16xf32, #tpu.memory_space<vmem>>, vector<1x1x16x16xf32>
    %4 = vector.shape_cast %3 : vector<1x1x16x16xf32> to vector<16x16xf32>
    %c0_8 = arith.constant 0 : index
    %c2 = arith.constant 2 : index
    %c2_9 = arith.constant 2 : index
    %5 = vector.load %arg6[%c0_8, %c2, %c2_9] : memref<2x20x20xf32, #tpu.memory_space<vmem>>, vector<1x16x16xf32>
    %6 = vector.shape_cast %5 : vector<1x16x16xf32> to vector<16x16xf32>
    %7 = vector.shape_cast %4 : vector<16x16xf32> to vector<1x16x16xf32>
    tpu.vector_store %arg6[%c0_8, %c2, %c2_9], %7 {strides = array<i32>} : memref<2x20x20xf32, #tpu.memory_space<vmem>>, vector<1x16x16xf32>,
    %c0_10 = arith.constant 0 : index
    %c1 = arith.constant 1 : index
    %c0_11 = arith.constant 0 : index
    %c0_12 = arith.constant 0 : index
    %8 = vector.load %arg3[%c0_10, %c1, %c0_11, %c0_12] : memref<1x2x16x16xf32, #tpu.memory_space<vmem>>, vector<1x1x16x16xf32>
    %9 = vector.shape_cast %8 : vector<1x1x16x16xf32> to vector<16x16xf32>
    %c1_13 = arith.constant 1 : index
    %c2_14 = arith.constant 2 : index
    %c2_15 = arith.constant 2 : index
    %10 = vector.load %arg6[%c1_13, %c2_14, %c2_15] : memref<2x20x20xf32, #tpu.memory_space<vmem>>, vector<1x16x16xf32>
    %11 = vector.shape_cast %10 : vector<1x16x16xf32> to vector<16x16xf32>
    %12 = vector.shape_cast %9 : vector<16x16xf32> to vector<1x16x16xf32>
    tpu.vector_store %arg6[%c1_13, %c2_14, %c2_15], %12 {strides = array<i32>} : memref<2x20x20xf32, #tpu.memory_space<vmem>>, vector<1x16x16xf32>,
    %cst_16 = arith.constant 0.000000e+00 : f32
    %13 = vector.broadcast %cst_16 : f32 to vector<2x16xf32>
    %c0_i32 = arith.constant 0 : i32
    %14 = arith.cmpi sgt, %arg1, %c0_i32 : i32
    %15 = arith.extui %14 : i1 to i32
    %c0_i32_17 = arith.constant 0 : i32
    %16 = arith.cmpi ne, %15, %c0_i32_17 : i32
    scf.if %16 {
      %c0_86 = arith.constant 0 : index
      %c0_87 = arith.constant 0 : index
      %c6 = arith.constant 6 : index
      %c0_88 = arith.constant 0 : index
      %140 = vector.load %arg2[%c0_86, %c0_87, %c6, %c0_88] : memref<1x2x8x16xf32, #tpu.memory_space<vmem>>, vector<1x1x2x16xf32>
      %141 = vector.shape_cast %140 : vector<1x1x2x16xf32> to vector<2x16xf32>
      %c0_89 = arith.constant 0 : index
      %c0_90 = arith.constant 0 : index
      %c2_91 = arith.constant 2 : index
      %142 = vector.load %arg6[%c0_89, %c0_90, %c2_91] : memref<2x20x20xf32, #tpu.memory_space<vmem>>, vector<1x2x16xf32>
      %143 = vector.shape_cast %142 : vector<1x2x16xf32> to vector<2x16xf32>
      %144 = vector.shape_cast %141 : vector<2x16xf32> to vector<1x2x16xf32>
      tpu.vector_store %arg6[%c0_89, %c0_90, %c2_91], %144 {strides = array<i32>} : memref<2x20x20xf32, #tpu.memory_space<vmem>>, vector<1x2x16xf32>,
      %c0_92 = arith.constant 0 : index
      %c1_93 = arith.constant 1 : index
      %c6_94 = arith.constant 6 : index
      %c0_95 = arith.constant 0 : index
      %145 = vector.load %arg2[%c0_92, %c1_93, %c6_94, %c0_95] : memref<1x2x8x16xf32, #tpu.memory_space<vmem>>, vector<1x1x2x16xf32>
      %146 = vector.shape_cast %145 : vector<1x1x2x16xf32> to vector<2x16xf32>
      %c1_96 = arith.constant 1 : index
      %c0_97 = arith.constant 0 : index
      %c2_98 = arith.constant 2 : index
      %147 = vector.load %arg6[%c1_96, %c0_97, %c2_98] : memref<2x20x20xf32, #tpu.memory_space<vmem>>, vector<1x2x16xf32>
      %148 = vector.shape_cast %147 : vector<1x2x16xf32> to vector<2x16xf32>
      %149 = vector.shape_cast %146 : vector<2x16xf32> to vector<1x2x16xf32>
      tpu.vector_store %arg6[%c1_96, %c0_97, %c2_98], %149 {strides = array<i32>} : memref<2x20x20xf32, #tpu.memory_space<vmem>>, vector<1x2x16xf32>,
    } else {
    }
    %c0_i32_18 = arith.constant 0 : i32
    %17 = arith.cmpi eq, %arg1, %c0_i32_18 : i32
    %18 = arith.extui %17 : i1 to i32
    %c0_i32_19 = arith.constant 0 : i32
    %19 = arith.cmpi ne, %18, %c0_i32_19 : i32
    scf.if %19 {
      %c0_86 = arith.constant 0 : index
      %c0_87 = arith.constant 0 : index
      %c2_88 = arith.constant 2 : index
      %140 = vector.load %arg6[%c0_86, %c0_87, %c2_88] : memref<2x20x20xf32, #tpu.memory_space<vmem>>, vector<1x2x16xf32>
      %141 = vector.shape_cast %140 : vector<1x2x16xf32> to vector<2x16xf32>
      %142 = vector.shape_cast %13 : vector<2x16xf32> to vector<1x2x16xf32>
      tpu.vector_store %arg6[%c0_86, %c0_87, %c2_88], %142 {strides = array<i32>} : memref<2x20x20xf32, #tpu.memory_space<vmem>>, vector<1x2x16xf32>,
      %c1_89 = arith.constant 1 : index
      %c0_90 = arith.constant 0 : index
      %c2_91 = arith.constant 2 : index
      %143 = vector.load %arg6[%c1_89, %c0_90, %c2_91] : memref<2x20x20xf32, #tpu.memory_space<vmem>>, vector<1x2x16xf32>
      %144 = vector.shape_cast %143 : vector<1x2x16xf32> to vector<2x16xf32>
      %145 = vector.shape_cast %13 : vector<2x16xf32> to vector<1x2x16xf32>
      tpu.vector_store %arg6[%c1_89, %c0_90, %c2_91], %145 {strides = array<i32>} : memref<2x20x20xf32, #tpu.memory_space<vmem>>, vector<1x2x16xf32>,
    } else {
    }
    %c0_i32_20 = arith.constant 0 : i32
    %20 = arith.cmpi slt, %arg1, %c0_i32_20 : i32
    %21 = arith.extui %20 : i1 to i32
    %c0_i32_21 = arith.constant 0 : i32
    %22 = arith.cmpi ne, %21, %c0_i32_21 : i32
    scf.if %22 {
      %c0_86 = arith.constant 0 : index
      %c0_87 = arith.constant 0 : index
      %c0_88 = arith.constant 0 : index
      %c0_89 = arith.constant 0 : index
      %140 = vector.load %arg4[%c0_86, %c0_87, %c0_88, %c0_89] : memref<1x2x8x16xf32, #tpu.memory_space<vmem>>, vector<1x1x2x16xf32>
      %141 = vector.shape_cast %140 : vector<1x1x2x16xf32> to vector<2x16xf32>
      %c0_90 = arith.constant 0 : index
      %c18_91 = arith.constant 18 : index
      %c2_92 = arith.constant 2 : index
      %142 = vector.load %arg6[%c0_90, %c18_91, %c2_92] : memref<2x20x20xf32, #tpu.memory_space<vmem>>, vector<1x2x16xf32>
      %143 = vector.shape_cast %142 : vector<1x2x16xf32> to vector<2x16xf32>
      %144 = vector.shape_cast %141 : vector<2x16xf32> to vector<1x2x16xf32>
      tpu.vector_store %arg6[%c0_90, %c18_91, %c2_92], %144 {strides = array<i32>} : memref<2x20x20xf32, #tpu.memory_space<vmem>>, vector<1x2x16xf32>,
      %c0_93 = arith.constant 0 : index
      %c1_94 = arith.constant 1 : index
      %c0_95 = arith.constant 0 : index
      %c0_96 = arith.constant 0 : index
      %145 = vector.load %arg4[%c0_93, %c1_94, %c0_95, %c0_96] : memref<1x2x8x16xf32, #tpu.memory_space<vmem>>, vector<1x1x2x16xf32>
      %146 = vector.shape_cast %145 : vector<1x1x2x16xf32> to vector<2x16xf32>
      %c1_97 = arith.constant 1 : index
      %c18_98 = arith.constant 18 : index
      %c2_99 = arith.constant 2 : index
      %147 = vector.load %arg6[%c1_97, %c18_98, %c2_99] : memref<2x20x20xf32, #tpu.memory_space<vmem>>, vector<1x2x16xf32>
      %148 = vector.shape_cast %147 : vector<1x2x16xf32> to vector<2x16xf32>
      %149 = vector.shape_cast %146 : vector<2x16xf32> to vector<1x2x16xf32>
      tpu.vector_store %arg6[%c1_97, %c18_98, %c2_99], %149 {strides = array<i32>} : memref<2x20x20xf32, #tpu.memory_space<vmem>>, vector<1x2x16xf32>,
    } else {
    }
    %c0_i32_22 = arith.constant 0 : i32
    %23 = arith.cmpi eq, %arg1, %c0_i32_22 : i32
    %24 = arith.extui %23 : i1 to i32
    %c0_i32_23 = arith.constant 0 : i32
    %25 = arith.cmpi ne, %24, %c0_i32_23 : i32
    scf.if %25 {
      %c0_86 = arith.constant 0 : index
      %c18_87 = arith.constant 18 : index
      %c2_88 = arith.constant 2 : index
      %140 = vector.load %arg6[%c0_86, %c18_87, %c2_88] : memref<2x20x20xf32, #tpu.memory_space<vmem>>, vector<1x2x16xf32>
      %141 = vector.shape_cast %140 : vector<1x2x16xf32> to vector<2x16xf32>
      %142 = vector.shape_cast %13 : vector<2x16xf32> to vector<1x2x16xf32>
      tpu.vector_store %arg6[%c0_86, %c18_87, %c2_88], %142 {strides = array<i32>} : memref<2x20x20xf32, #tpu.memory_space<vmem>>, vector<1x2x16xf32>,
      %c1_89 = arith.constant 1 : index
      %c18_90 = arith.constant 18 : index
      %c2_91 = arith.constant 2 : index
      %143 = vector.load %arg6[%c1_89, %c18_90, %c2_91] : memref<2x20x20xf32, #tpu.memory_space<vmem>>, vector<1x2x16xf32>
      %144 = vector.shape_cast %143 : vector<1x2x16xf32> to vector<2x16xf32>
      %145 = vector.shape_cast %13 : vector<2x16xf32> to vector<1x2x16xf32>
      tpu.vector_store %arg6[%c1_89, %c18_90, %c2_91], %145 {strides = array<i32>} : memref<2x20x20xf32, #tpu.memory_space<vmem>>, vector<1x2x16xf32>,
    } else {
    }
    %c0_24 = arith.constant 0 : index
    %c0_25 = arith.constant 0 : index
    %c0_26 = arith.constant 0 : index
    %26 = vector.load %arg6[%c0_24, %c0_25, %c0_26] : memref<2x20x20xf32, #tpu.memory_space<vmem>>, vector<1x20x16xf32>
    %27 = vector.shape_cast %26 : vector<1x20x16xf32> to vector<20x16xf32>
    %c0_27 = arith.constant 0 : index
    %c0_28 = arith.constant 0 : index
    %c1_29 = arith.constant 1 : index
    %28 = vector.load %arg6[%c0_27, %c0_28, %c1_29] : memref<2x20x20xf32, #tpu.memory_space<vmem>>, vector<1x20x16xf32>
    %29 = vector.shape_cast %28 : vector<1x20x16xf32> to vector<20x16xf32>
    %c0_30 = arith.constant 0 : index
    %c0_31 = arith.constant 0 : index
    %c2_32 = arith.constant 2 : index
    %30 = vector.load %arg6[%c0_30, %c0_31, %c2_32] : memref<2x20x20xf32, #tpu.memory_space<vmem>>, vector<1x20x16xf32>
    %31 = vector.shape_cast %30 : vector<1x20x16xf32> to vector<20x16xf32>
    %c0_33 = arith.constant 0 : index
    %c0_34 = arith.constant 0 : index
    %c3 = arith.constant 3 : index
    %32 = vector.load %arg6[%c0_33, %c0_34, %c3] : memref<2x20x20xf32, #tpu.memory_space<vmem>>, vector<1x20x16xf32>
    %33 = vector.shape_cast %32 : vector<1x20x16xf32> to vector<20x16xf32>
    %c0_35 = arith.constant 0 : index
    %c0_36 = arith.constant 0 : index
    %c4 = arith.constant 4 : index
    %34 = vector.load %arg6[%c0_35, %c0_36, %c4] : memref<2x20x20xf32, #tpu.memory_space<vmem>>, vector<1x20x16xf32>
    %35 = vector.shape_cast %34 : vector<1x20x16xf32> to vector<20x16xf32>
    %36 = arith.subf %35, %27 : vector<20x16xf32>
    %cst_37 = arith.constant 2.500000e-01 : f32
    %37 = vector.broadcast %cst_37 : f32 to vector<20x16xf32>
    %38 = arith.mulf %37, %36 : vector<20x16xf32>
    %39 = arith.subf %33, %29 : vector<20x16xf32>
    %cst_38 = arith.constant 5.000000e-01 : f32
    %40 = vector.broadcast %cst_38 : f32 to vector<20x16xf32>
    %41 = arith.mulf %40, %39 : vector<20x16xf32>
    %42 = arith.addf %38, %41 : vector<20x16xf32>
    %43 = arith.addf %29, %33 : vector<20x16xf32>
    %cst_39 = arith.constant 5.000000e-01 : f32
    %44 = vector.broadcast %cst_39 : f32 to vector<20x16xf32>
    %45 = arith.mulf %44, %43 : vector<20x16xf32>
    %46 = arith.addf %31, %45 : vector<20x16xf32>
    %47 = arith.addf %27, %35 : vector<20x16xf32>
    %cst_40 = arith.constant 2.500000e-01 : f32
    %48 = vector.broadcast %cst_40 : f32 to vector<20x16xf32>
    %49 = arith.mulf %48, %47 : vector<20x16xf32>
    %50 = arith.addf %46, %49 : vector<20x16xf32>
    %51 = vector.extract_strided_slice %42 {offsets = [2, 0], sizes = [16, 16], strides = [1, 1]} : vector<20x16xf32> to vector<16x16xf32>
    %cst_41 = arith.constant 2.000000e-01 : f32
    %52 = vector.broadcast %cst_41 : f32 to vector<16x16xf32>
    %53 = arith.mulf %52, %51 : vector<16x16xf32>
    %54 = vector.extract_strided_slice %42 {offsets = [1, 0], sizes = [16, 16], strides = [1, 1]} : vector<20x16xf32> to vector<16x16xf32>
    %55 = vector.extract_strided_slice %42 {offsets = [3, 0], sizes = [16, 16], strides = [1, 1]} : vector<20x16xf32> to vector<16x16xf32>
    %56 = arith.addf %54, %55 : vector<16x16xf32>
    %cst_42 = arith.constant 1.000000e-01 : f32
    %57 = vector.broadcast %cst_42 : f32 to vector<16x16xf32>
    %58 = arith.mulf %57, %56 : vector<16x16xf32>
    %59 = arith.addf %53, %58 : vector<16x16xf32>
    %60 = vector.extract_strided_slice %42 {offsets = [0, 0], sizes = [16, 16], strides = [1, 1]} : vector<20x16xf32> to vector<16x16xf32>
    %61 = vector.extract_strided_slice %42 {offsets = [4, 0], sizes = [16, 16], strides = [1, 1]} : vector<20x16xf32> to vector<16x16xf32>
    %62 = arith.addf %60, %61 : vector<16x16xf32>
    %cst_43 = arith.constant 5.000000e-02 : f32
    %63 = vector.broadcast %cst_43 : f32 to vector<16x16xf32>
    %64 = arith.mulf %63, %62 : vector<16x16xf32>
    %65 = arith.addf %59, %64 : vector<16x16xf32>
    %66 = vector.extract_strided_slice %50 {offsets = [3, 0], sizes = [16, 16], strides = [1, 1]} : vector<20x16xf32> to vector<16x16xf32>
    %67 = vector.extract_strided_slice %50 {offsets = [1, 0], sizes = [16, 16], strides = [1, 1]} : vector<20x16xf32> to vector<16x16xf32>
    %68 = arith.subf %66, %67 : vector<16x16xf32>
    %cst_44 = arith.constant 1.000000e-01 : f32
    %69 = vector.broadcast %cst_44 : f32 to vector<16x16xf32>
    %70 = arith.mulf %69, %68 : vector<16x16xf32>
    %71 = vector.extract_strided_slice %50 {offsets = [4, 0], sizes = [16, 16], strides = [1, 1]} : vector<20x16xf32> to vector<16x16xf32>
    %72 = vector.extract_strided_slice %50 {offsets = [0, 0], sizes = [16, 16], strides = [1, 1]} : vector<20x16xf32> to vector<16x16xf32>
    %73 = arith.subf %71, %72 : vector<16x16xf32>
    %cst_45 = arith.constant 5.000000e-02 : f32
    %74 = vector.broadcast %cst_45 : f32 to vector<16x16xf32>
    %75 = arith.mulf %74, %73 : vector<16x16xf32>
    %76 = arith.addf %70, %75 : vector<16x16xf32>
    %c0_46 = arith.constant 0 : index
    %c0_47 = arith.constant 0 : index
    %c0_48 = arith.constant 0 : index
    %c0_49 = arith.constant 0 : index
    %77 = vector.load %arg5[%c0_46, %c0_47, %c0_48, %c0_49] : memref<1x4x16x16xf32, #tpu.memory_space<vmem>>, vector<1x1x16x16xf32>
    %78 = vector.shape_cast %77 : vector<1x1x16x16xf32> to vector<16x16xf32>
    %79 = vector.shape_cast %65 : vector<16x16xf32> to vector<1x1x16x16xf32>
    tpu.vector_store %arg5[%c0_46, %c0_47, %c0_48, %c0_49], %79 {strides = array<i32>} : memref<1x4x16x16xf32, #tpu.memory_space<vmem>>, vector<1x1x16x16xf32>,
    %c0_50 = arith.constant 0 : index
    %c1_51 = arith.constant 1 : index
    %c0_52 = arith.constant 0 : index
    %c0_53 = arith.constant 0 : index
    %80 = vector.load %arg5[%c0_50, %c1_51, %c0_52, %c0_53] : memref<1x4x16x16xf32, #tpu.memory_space<vmem>>, vector<1x1x16x16xf32>
    %81 = vector.shape_cast %80 : vector<1x1x16x16xf32> to vector<16x16xf32>
    %82 = vector.shape_cast %76 : vector<16x16xf32> to vector<1x1x16x16xf32>
    tpu.vector_store %arg5[%c0_50, %c1_51, %c0_52, %c0_53], %82 {strides = array<i32>} : memref<1x4x16x16xf32, #tpu.memory_space<vmem>>, vector<1x1x16x16xf32>,
    %c1_54 = arith.constant 1 : index
    %c0_55 = arith.constant 0 : index
    %c0_56 = arith.constant 0 : index
    %83 = vector.load %arg6[%c1_54, %c0_55, %c0_56] : memref<2x20x20xf32, #tpu.memory_space<vmem>>, vector<1x20x16xf32>
    %84 = vector.shape_cast %83 : vector<1x20x16xf32> to vector<20x16xf32>
    %c1_57 = arith.constant 1 : index
    %c0_58 = arith.constant 0 : index
    %c1_59 = arith.constant 1 : index
    %85 = vector.load %arg6[%c1_57, %c0_58, %c1_59] : memref<2x20x20xf32, #tpu.memory_space<vmem>>, vector<1x20x16xf32>
    %86 = vector.shape_cast %85 : vector<1x20x16xf32> to vector<20x16xf32>
    %c1_60 = arith.constant 1 : index
    %c0_61 = arith.constant 0 : index
    %c2_62 = arith.constant 2 : index
    %87 = vector.load %arg6[%c1_60, %c0_61, %c2_62] : memref<2x20x20xf32, #tpu.memory_space<vmem>>, vector<1x20x16xf32>
    %88 = vector.shape_cast %87 : vector<1x20x16xf32> to vector<20x16xf32>
    %c1_63 = arith.constant 1 : index
    %c0_64 = arith.constant 0 : index
    %c3_65 = arith.constant 3 : index
    %89 = vector.load %arg6[%c1_63, %c0_64, %c3_65] : memref<2x20x20xf32, #tpu.memory_space<vmem>>, vector<1x20x16xf32>
    %90 = vector.shape_cast %89 : vector<1x20x16xf32> to vector<20x16xf32>
    %c1_66 = arith.constant 1 : index
    %c0_67 = arith.constant 0 : index
    %c4_68 = arith.constant 4 : index
    %91 = vector.load %arg6[%c1_66, %c0_67, %c4_68] : memref<2x20x20xf32, #tpu.memory_space<vmem>>, vector<1x20x16xf32>
    %92 = vector.shape_cast %91 : vector<1x20x16xf32> to vector<20x16xf32>
    %93 = arith.subf %92, %84 : vector<20x16xf32>
    %cst_69 = arith.constant 2.500000e-01 : f32
    %94 = vector.broadcast %cst_69 : f32 to vector<20x16xf32>
    %95 = arith.mulf %94, %93 : vector<20x16xf32>
    %96 = arith.subf %90, %86 : vector<20x16xf32>
    %cst_70 = arith.constant 5.000000e-01 : f32
    %97 = vector.broadcast %cst_70 : f32 to vector<20x16xf32>
    %98 = arith.mulf %97, %96 : vector<20x16xf32>
    %99 = arith.addf %95, %98 : vector<20x16xf32>
    %100 = arith.addf %86, %90 : vector<20x16xf32>
    %cst_71 = arith.constant 5.000000e-01 : f32
    %101 = vector.broadcast %cst_71 : f32 to vector<20x16xf32>
    %102 = arith.mulf %101, %100 : vector<20x16xf32>
    %103 = arith.addf %88, %102 : vector<20x16xf32>
    %104 = arith.addf %84, %92 : vector<20x16xf32>
    %cst_72 = arith.constant 2.500000e-01 : f32
    %105 = vector.broadcast %cst_72 : f32 to vector<20x16xf32>
    %106 = arith.mulf %105, %104 : vector<20x16xf32>
    %107 = arith.addf %103, %106 : vector<20x16xf32>
    %108 = vector.extract_strided_slice %99 {offsets = [2, 0], sizes = [16, 16], strides = [1, 1]} : vector<20x16xf32> to vector<16x16xf32>
    %cst_73 = arith.constant 2.000000e-01 : f32
    %109 = vector.broadcast %cst_73 : f32 to vector<16x16xf32>
    %110 = arith.mulf %109, %108 : vector<16x16xf32>
    %111 = vector.extract_strided_slice %99 {offsets = [1, 0], sizes = [16, 16], strides = [1, 1]} : vector<20x16xf32> to vector<16x16xf32>
    %112 = vector.extract_strided_slice %99 {offsets = [3, 0], sizes = [16, 16], strides = [1, 1]} : vector<20x16xf32> to vector<16x16xf32>
    %113 = arith.addf %111, %112 : vector<16x16xf32>
    %cst_74 = arith.constant 1.000000e-01 : f32
    %114 = vector.broadcast %cst_74 : f32 to vector<16x16xf32>
    %115 = arith.mulf %114, %113 : vector<16x16xf32>
    %116 = arith.addf %110, %115 : vector<16x16xf32>
    %117 = vector.extract_strided_slice %99 {offsets = [0, 0], sizes = [16, 16], strides = [1, 1]} : vector<20x16xf32> to vector<16x16xf32>
    %118 = vector.extract_strided_slice %99 {offsets = [4, 0], sizes = [16, 16], strides = [1, 1]} : vector<20x16xf32> to vector<16x16xf32>
    %119 = arith.addf %117, %118 : vector<16x16xf32>
    %cst_75 = arith.constant 5.000000e-02 : f32
    %120 = vector.broadcast %cst_75 : f32 to vector<16x16xf32>
    %121 = arith.mulf %120, %119 : vector<16x16xf32>
    %122 = arith.addf %116, %121 : vector<16x16xf32>
    %123 = vector.extract_strided_slice %107 {offsets = [3, 0], sizes = [16, 16], strides = [1, 1]} : vector<20x16xf32> to vector<16x16xf32>
    %124 = vector.extract_strided_slice %107 {offsets = [1, 0], sizes = [16, 16], strides = [1, 1]} : vector<20x16xf32> to vector<16x16xf32>
    %125 = arith.subf %123, %124 : vector<16x16xf32>
    %cst_76 = arith.constant 1.000000e-01 : f32
    %126 = vector.broadcast %cst_76 : f32 to vector<16x16xf32>
    %127 = arith.mulf %126, %125 : vector<16x16xf32>
    %128 = vector.extract_strided_slice %107 {offsets = [4, 0], sizes = [16, 16], strides = [1, 1]} : vector<20x16xf32> to vector<16x16xf32>
    %129 = vector.extract_strided_slice %107 {offsets = [0, 0], sizes = [16, 16], strides = [1, 1]} : vector<20x16xf32> to vector<16x16xf32>
    %130 = arith.subf %128, %129 : vector<16x16xf32>
    %cst_77 = arith.constant 5.000000e-02 : f32
    %131 = vector.broadcast %cst_77 : f32 to vector<16x16xf32>
    %132 = arith.mulf %131, %130 : vector<16x16xf32>
    %133 = arith.addf %127, %132 : vector<16x16xf32>
    %c0_78 = arith.constant 0 : index
    %c2_79 = arith.constant 2 : index
    %c0_80 = arith.constant 0 : index
    %c0_81 = arith.constant 0 : index
    %134 = vector.load %arg5[%c0_78, %c2_79, %c0_80, %c0_81] : memref<1x4x16x16xf32, #tpu.memory_space<vmem>>, vector<1x1x16x16xf32>
    %135 = vector.shape_cast %134 : vector<1x1x16x16xf32> to vector<16x16xf32>
    %136 = vector.shape_cast %122 : vector<16x16xf32> to vector<1x1x16x16xf32>
    tpu.vector_store %arg5[%c0_78, %c2_79, %c0_80, %c0_81], %136 {strides = array<i32>} : memref<1x4x16x16xf32, #tpu.memory_space<vmem>>, vector<1x1x16x16xf32>,
    %c0_82 = arith.constant 0 : index
    %c3_83 = arith.constant 3 : index
    %c0_84 = arith.constant 0 : index
    %c0_85 = arith.constant 0 : index
    %137 = vector.load %arg5[%c0_82, %c3_83, %c0_84, %c0_85] : memref<1x4x16x16xf32, #tpu.memory_space<vmem>>, vector<1x1x16x16xf32>
    %138 = vector.shape_cast %137 : vector<1x1x16x16xf32> to vector<16x16xf32>
    %139 = vector.shape_cast %133 : vector<16x16xf32> to vector<1x1x16x16xf32>
    tpu.vector_store %arg5[%c0_82, %c3_83, %c0_84, %c0_85], %139 {strides = array<i32>} : memref<1x4x16x16xf32, #tpu.memory_space<vmem>>, vector<1x1x16x16xf32>,
    return
  }
  func.func @transform_0(%arg0: i32, %arg1: i32) -> (i32, i32, i32, i32) {
    %c2_i32 = arith.constant 2 : i32
    %0 = arith.muli %arg1, %c2_i32 : i32
    %c1_i32 = arith.constant 1 : i32
    %1 = arith.subi %0, %c1_i32 : i32
    %c0_i32 = arith.constant 0 : i32
    %2 = arith.maxsi %1, %c0_i32 : i32
    %c0_i32_0 = arith.constant 0 : i32
    %c0_i32_1 = arith.constant 0 : i32
    %c0_i32_2 = arith.constant 0 : i32
    return %arg0, %c0_i32_0, %2, %c0_i32_1 : i32, i32, i32, i32
  }
  func.func @transform_1(%arg0: i32, %arg1: i32) -> (i32, i32, i32, i32) {
    %c0_i32 = arith.constant 0 : i32
    %c0_i32_0 = arith.constant 0 : i32
    %c0_i32_1 = arith.constant 0 : i32
    return %arg0, %c0_i32, %arg1, %c0_i32_0 : i32, i32, i32, i32
  }
  func.func @transform_2(%arg0: i32, %arg1: i32) -> (i32, i32, i32, i32) {
    %c1_i32 = arith.constant 1 : i32
    %0 = arith.addi %arg1, %c1_i32 : i32
    %c2_i32 = arith.constant 2 : i32
    %1 = arith.muli %0, %c2_i32 : i32
    %c1_i32_0 = arith.constant 1 : i32
    %2 = arith.minsi %1, %c1_i32_0 : i32
    %c0_i32 = arith.constant 0 : i32
    %c0_i32_1 = arith.constant 0 : i32
    %c0_i32_2 = arith.constant 0 : i32
    return %arg0, %c0_i32, %2, %c0_i32_1 : i32, i32, i32, i32
  }
  func.func @transform_3(%arg0: i32, %arg1: i32) -> (i32, i32, i32, i32) {
    %c0_i32 = arith.constant 0 : i32
    %c0_i32_0 = arith.constant 0 : i32
    %c0_i32_1 = arith.constant 0 : i32
    return %arg0, %c0_i32, %arg1, %c0_i32_0 : i32, i32, i32, i32
  }
}

</mosaic_0001>

<bundles_post_ra>
// kernel: tpu_custom_call.1
= control target key start
LH: loop header
LB: loop body
LE: loop exit
PB: predicated region body
PF: predicated region fallthrough
CT: control target
= control target key end

     0   :  { %s1930_s0 = inlined_call_operand.hbm [shape: f32[2,2,16,16], index: 0, kind: input, shape index: {}]   ;;  %s1931_s1 = inlined_call_operand.hbm [shape: f32[2,2,16,16], index: 1, kind: input, shape index: {}]   ;;  %s1932_s2 = inlined_call_operand.hbm [shape: f32[2,2,16,16], index: 2, kind: input, shape index: {}]   ;;  %s1933_s3 = inlined_call_operand.hbm [shape: f32[2,4,16,16], index: 3, kind: output, shape index: {}]  }
   0x1   :  { %1942 = sst [smem:[#allocation16_spill]] %s1931_s1 }
   0x2   :  { %8 = vsyncpa [#allocation4], 0 }
   0x3   :  { %10 = vsyncpa [#allocation4 + $0x1], 0 }
   0x4   :  { %11 = vsyncpa [#allocation7], 0 }
   0x5   :  { %13 = vsyncpa [#allocation7 + $0x1], 0 }
   0x6   :  { %14 = vsyncpa [#allocation5], 0 }
   0x7   :  { %16 = vsyncpa [#allocation5 + $0x1], 0  ;;  %s1397_s12 = smov 0   ;;  %s1399_s13 = smov 0  }
   0x8   :  { %s1401_s14 = smov 0   ;;  %s1403_s15 = smov 0  }
   0x9   :  { %s1405_s16 = smov 0   ;;  %s1407_s17 = smov 0  }
   0xa LB: > { %1943 = sst [smem:[#allocation13_spill]] %s1356_s16  ;;  %s1428_s18 = sadd.s32 4294967295, %s1360_s17   ;;  %s1360_s17 = sphi %s1407_s17, %s22_s17   ;;  %s1356_s16 = sphi %s1405_s16, %s1963_s16   ;;  %s1352_s15 = sphi %s1403_s15, %s1962_s15   ;;  %s1348_s14 = sphi %s1401_s14, %s1966_s14   ;;  %s1344_s13 = sphi %s1399_s13, %s1965_s13   ;;  %s1340_s12 = sphi %s1397_s12, %s1964_s12  }
   0xb   : > { %s1060_s19 = sadd.s32 4294967294, %s1360_s17   ;;  %s34_s20 = sadd.s32 1, %s1356_s16 }
   0xc   : > { %s51_s21 = sadd.s32 1, %s1348_s14  ;;  %p36_p0 = scmp.ge.s32.totalorder %s34_s20, 2 }
   0xd   : > { %p58_p1 = scmp.ne.s32.totalorder %s1348_s14, %s1344_s13  ;;  %p59_p2 = scmp.eq.s32.totalorder %s1360_s17, 0 }
   0xe   : > { %p64_p3 = scmp.ne.s32.totalorder %s1344_s13, %s1340_s12  ;;  %s1968_s20 = smov (%p36_p0, %s34_s20), 0 }
   0xf   : > { %1944 = sst [smem:[#allocation14_spill]] %s1968_s20  ;;  %p1440_p4 = por %p59_p2, %p58_p1 }
  0x10   : > { %p65_p5 = scmp.eq.s32.totalorder %s1428_s18, 0  ;;  %s46_s23 = ssub.s32 %s1356_s16, %s1968_s20 }
  0x11   : > { %p154_p6 = scmp.eq.s32.totalorder %s1428_s18, 1  ;;  %p49_p7 = scmp.eq.s32.totalorder %s46_s23, 0 }
  0x12   : > { %p1448_p8 = por %p65_p5, %p64_p3  ;;  %p160_p10 = scmp.eq.s32.totalorder %s1060_s19, 1 }
  0x13   : > { %p1452_p9 = por %p154_p6, %p58_p1  ;;  %p1123_p13 = scmp.lt.s32.totalorder %s1360_s17, 2 }
  0x14   : > { %s1946_s24 = scalar_select %p1448_p8, 1, 0 }
  0x15   : > { %s1947_s25 = scalar_select %p1452_p9, 1, 0 }
  0x16   : > { %s1457_s26 = scalar_select %p49_p7, %s1348_s14, %s51_s21  }
  0x17   : > { %p1459_p11 = por %p160_p10, %p64_p3  ;;  %s1466_s28 = sand.u32 1, %s1348_s14  }
  0x18   : > { %1948 = sst [smem:[#allocation15_spill]] %s1457_s26  ;;  %s1469_s29 = sshll.u32 %s1356_s16, 9 }
  0x19   : > { %s1949_s27 = scalar_select %p1459_p11, 1, 0 }
  0x1a   : > { %p1473_p0 = pnand %p1123_p13, %p1440_p4  ;;  %s206_s4 = sand.u32 1, %s1360_s17  }
  0x1b   : > { %s1066_s5 = sshll.u32 %s1466_s28, 5  ;;  %s1951_s1 = sld [smem:[#allocation16_spill]] }
  0x1c   : > { %s210_s9 = scalar_lea.vmem [#allocation6], %s1066_s5  ;;  %s1098_s11 = sadd.s32 128, %s1469_s29 }
  0x1d   : > { %s219_s10 = sshll.u32 %s210_s9, 4  ;;  %s1491_s22 = scalar_lea.hbm %s1932_s2, %s1098_s11  ;;  %s1486_s10 = int_to_ptr.vmem [resolvable:$true] %s219_s10 }
  0x1e   : > { %s1493_s23 = scalar_lea.sflag [#allocation7], %s206_s4  ;;  %p1499_p2 = pneg %p1473_p0 }
  0x21   : > { %s1483_s8 = scalar_lea.hbm %s1951_s1, %s1469_s29  ;;  %s1189_s9 = scalar_lea.hbm %s1951_s1, 1024 }
  0x22   : > { %s1184_s20 = scalar_lea.hbm %s1483_s8, 512  ;;  %p1190_p5 = scmp.lt.u32.totalorder %s1483_s8, %s1951_s1 }
  0x23   : > { %p1185_p1 = scmp.ne.s32.totalorder %s1483_s8, %s1184_s20  ;;  %p1191_p6 = scmp.lt.u32.totalorder %s1189_s9, %s1184_s20 }
  0x24   : > { %p1193_p10 = scmp.lt.u32.totalorder %s1184_s20, %s1483_s8 }
  0x25   : > { %p1187_p3 = pnand %p1499_p2, %p1185_p1  ;;  %p1192_p7 = por %p1191_p6, %p1190_p5 }
  0x27   : > { %p1188_p4 = pneg %p1187_p3  ;;  %p1194_p13 = por %p1193_p10, %p1192_p7 }
  0x29   : > { %p1195_p12 = pnand %p1194_p13, %p1188_p4 }
  0x2b   : > { %1198 = shalt.err (!%p1195_p12)
}
  0x2c   : > { %s1199_s4 = scalar_lea.vmem %s1486_s10, 512  ;;  %s1362_s21 = smov [#allocation6]  }
  0x2d   : > { %p1200_p1 = scmp.ne.s32.totalorder %s1486_s10, %s1199_s4  ;;  %s1204_s5 = sshll.u32 %s1362_s21, 4  ;;  %s1205_s5 = int_to_ptr.vmem [resolvable:$false] %s1204_s5 }
  0x2e   : > { %s1206_s7 = scalar_lea.vmem %s1205_s5, 1024  ;;  %p1207_p9 = scmp.lt.s32.totalorder %s1486_s10, %s1205_s5 }
  0x2f   : > { %p1202_p3 = pnand %p1200_p1, %p1499_p2  ;;  %p1208_p8 = scmp.lt.s32.totalorder %s1206_s7, %s1199_s4 }
  0x31   : > { %p1203_p11 = pneg %p1202_p3  ;;  %p1209_p5 = por %p1208_p8, %p1207_p9 }
  0x33   : > { %p1210_p6 = pnand %p1209_p5, %p1203_p11 }
  0x35   : > { %1213 = shalt.err (!%p1210_p6)
}
  0x36   : > { %s1937_s20 = smov 128   ;;  %s1939_s9 = smov 8  }
  0x37   : > { %1115 = dma.hbm_to_vmem [thread:$0]  (!%p1473_p0), %s1483_s8, 512, %s1486_s10, %s1493_s23, %s1937_s20, %s1937_s20, %s1939_s9  }
  0x38   : > { %p1072_p8 = scmp.ge.s32.totalorder %s1360_s17, 1  ;;  %p253_p9 = scmp.lt.s32.totalorder %s1360_s17, 3 }
  0x39   : > { %s1063_s11 = sshll.u32 %s1466_s28, 4  ;;  %s1537_s5 = scalar_lea.hbm %s1930_s0, %s1469_s29 }
  0x3a   : > { %p1528_p11 = pnand %p1072_p8, %p253_p9  ;;  %s184_s7 = scalar_lea.vmem [#allocation3], %s1063_s11 }
  0x3b   : > { %s196_s1 = sshll.u32 %s184_s7, 4  ;;  %s1541_s8 = scalar_lea.vmem [#allocation8], %s1063_s11  ;;  %s1539_s1 = int_to_ptr.vmem [resolvable:$true] %s196_s1 }
  0x3c   : > { %s1953_s19 = scalar_select %p1528_p11, 1, 0 }
  0x3d   : > { %s245_s10 = sshll.u32 %s1541_s8, 4  ;;  %s181_s20 = scalar_lea.sflag [#allocation4], %s1466_s28  ;;  %s1573_s10 = int_to_ptr.vmem [resolvable:$true] %s245_s10 }
  0x3e   : > { %s1214_s9 = scalar_lea.hbm %s1537_s5, 256  ;;  %s1219_s21 = scalar_lea.hbm %s1930_s0, 1024 }
  0x3f   : > { %p1215_p12 = scmp.ne.s32.totalorder %s1537_s5, %s1214_s9  ;;  %p1220_p10 = scmp.lt.u32.totalorder %s1537_s5, %s1930_s0 }
  0x40   : > { %p1221_p13 = scmp.lt.u32.totalorder %s1219_s21, %s1214_s9  ;;  %p1223_p3 = scmp.lt.u32.totalorder %s1214_s9, %s1537_s5 }
  0x41   : > { %p1217_p4 = pnand %p1215_p12, %p1499_p2 }
  0x42   : > { %p1222_p1 = por %p1221_p13, %p1220_p10 }
  0x43   : > { %p1218_p7 = pneg %p1217_p4 }
  0x44   : > { %p1224_p5 = por %p1223_p3, %p1222_p1 }
  0x46   : > { %p1225_p6 = pnand %p1224_p5, %p1218_p7 }
  0x48   : > { %1228 = shalt.err (!%p1225_p6)
}
  0x49   : > { %s1229_s11 = scalar_lea.vmem %s1539_s1, 256  ;;  %s1365_s7 = smov [#allocation3]  }
  0x4a   : > { %p1230_p8 = scmp.ne.s32.totalorder %s1539_s1, %s1229_s11  ;;  %s1234_s29 = sshll.u32 %s1365_s7, 4  ;;  %s1235_s29 = int_to_ptr.vmem [resolvable:$false] %s1234_s29 }
  0x4b   : > { %s1236_s16 = scalar_lea.vmem %s1235_s29, 512  ;;  %p1237_p4 = scmp.lt.s32.totalorder %s1539_s1, %s1235_s29 }
  0x4c   : > { %p1232_p9 = pnand %p1230_p8, %p1499_p2  ;;  %p1238_p11 = scmp.lt.s32.totalorder %s1236_s16, %s1229_s11 }
  0x4e   : > { %p1233_p12 = pneg %p1232_p9  ;;  %p1239_p10 = por %p1238_p11, %p1237_p4 }
  0x50   : > { %p1240_p13 = pnand %p1239_p10, %p1233_p12 }
  0x52   : > { %1243 = shalt.err (!%p1240_p13)
}
  0x53   : > { %s1366_s26 = smov 256   ;;  %s1954_s9 = smov 8  }
  0x54   : > { %s1955_s4 = smov 128   ;;  %s1244_s21 = scalar_lea.hbm %s1491_s22, 256 }
  0x55   : > { %1112 = dma.hbm_to_vmem [thread:$0]  (!%p1473_p0), %s1537_s5, 256, %s1539_s1, %s181_s20, %s1366_s26, %s1955_s4, %s1954_s9  }
  0x56   : > { %p1245_p11 = scmp.ne.s32.totalorder %s1491_s22, %s1244_s21  ;;  %s1249_s28 = scalar_lea.hbm %s1932_s2, 1024 }
  0x57   : > { %p1250_p3 = scmp.lt.u32.totalorder %s1491_s22, %s1932_s2  ;;  %p1251_p5 = scmp.lt.u32.totalorder %s1249_s28, %s1244_s21 }
  0x58   : > { %p1247_p7 = pnand %p1245_p11, %p1499_p2  ;;  %p1253_p8 = scmp.lt.u32.totalorder %s1244_s21, %s1491_s22 }
  0x59   : > { %p1252_p6 = por %p1251_p5, %p1250_p3 }
  0x5a   : > { %p1248_p1 = pneg %p1247_p7 }
  0x5b   : > { %p1254_p9 = por %p1253_p8, %p1252_p6 }
  0x5d   : > { %p1255_p12 = pnand %p1254_p9, %p1248_p1 }
  0x5f   : > { %1258 = shalt.err (!%p1255_p12)
}
  0x60   : > { %s1259_s1 = scalar_lea.vmem %s1573_s10, 256  ;;  %s1367_s20 = smov [#allocation8]  }
  0x61   : > { %p1260_p4 = scmp.ne.s32.totalorder %s1573_s10, %s1259_s1  ;;  %s1264_s5 = sshll.u32 %s1367_s20, 4  ;;  %s1265_s5 = int_to_ptr.vmem [resolvable:$false] %s1264_s5 }
  0x62   : > { %s1266_s8 = scalar_lea.vmem %s1265_s5, 512  ;;  %p1267_p11 = scmp.lt.s32.totalorder %s1573_s10, %s1265_s5 }
  0x63   : > { %p1262_p10 = pnand %p1260_p4, %p1499_p2  ;;  %p1268_p7 = scmp.lt.s32.totalorder %s1266_s8, %s1259_s1 }
  0x65   : > { %p1263_p13 = pneg %p1262_p10  ;;  %p1269_p3 = por %p1268_p7, %p1267_p11 }
  0x67   : > { %p1270_p5 = pnand %p1269_p3, %p1263_p13 }
  0x69   : > { %1273 = shalt.err (!%p1270_p5)
}
  0x6a   : > { %1118 = dma.hbm_to_vmem [thread:$0]  (!%p1473_p0), %s1491_s22, 256, %s1573_s10, %s1493_s23, %s1366_s26, %s1955_s4, %s1954_s9  }
  0x6b   : > { %p1956_p2 = scmp.ne.s32.totalorder %s1953_s19, 0 }
  0x6c   : > { %s1603_s6 = sand.u32 (!%p1956_p2), 1, %s1344_s13   ;;  %p1957_p1 = scmp.ne.s32.totalorder (!%p1956_p2), %s1946_s24, 0 }
  0x6d   : > { %257 = sbr.rel (%p1956_p2) target bundleno = 672 (0x2a0), region = 32  ;;  %s260_s21 = scalar_lea.sflag (!%p1956_p2), [#allocation4], %s1603_s6 }
  0x74   : > { %1327 = dma.done.wait (%p1957_p1), %s260_s21, 256  }
  0x75   : > { %1329 = vsyncadd (%p1957_p1), %s260_s21, 4294967040  ;;  %s268_s30 = sand.u32 1, %s1428_s18   ;;  %s1074_s11 = sshll.u32 %s1603_s6, 5 }
  0x76   : > { %s269_s22 = scalar_lea.sflag [#allocation7], %s268_s30  ;;  %s1612_s23 = scalar_lea.vmem [#allocation6], %s1074_s11 }
  0x77   : > { %1331 = dma.done.wait (%p1957_p1), %s269_s22, 768  }
  0x78   : > { %1333 = vsyncadd (%p1957_p1), %s269_s22, 4294966528  ;;  %vm324_vm0 = vcmask 15360   ;;  %vm332_vm1 = vcmask 162960   ;;  %vm389_vm2 = vcmask 140304   ;;  %v1368_v0 = vmov 0.0   ;;  %v340_v1 = vld [vmem:[%s1612_s23] sm:$0xff] }
  0x79   : > { %325 = vst.msk [vmem:[#allocation2] sm:$0xff] %vm324_vm0, %v1368_v0  ;;  %326 = vst.msk [vmem:[#allocation2 + $0x8] sm:$0xff] %vm324_vm0, %v1368_v0  ;;  %vm327_vm3 = vcmask 11264   ;;  %vm335_vm4 = vcmask 158864   ;;  %v1077_v2 = vld [vmem:[%s1612_s23 + $0x10] sm:$0xff]  ;;  %s1369_s18 = smov 2  }
  0x7a   : > { %329 = vst.msk [vmem:[#allocation2 + $0x18] sm:$0xff] %vm324_vm0, %v1368_v0  ;;  %330 = vst.msk [vmem:[#allocation2 + $0x20] sm:$0xff] %vm324_vm0, %v1368_v0  ;;  %344 = vrot.lane.b32.xlu0 %v340_v1, %s1369_s18  ;;  %358 = vrot.lane.b32.xlu1 %v1077_v2, %s1369_s18  ;;  %v341_v3 = vld [vmem:[%s1612_s23 + $0x8] sm:$0xff]  ;;  %v1078_v4 = vld [vmem:[%s1612_s23 + $0x18] sm:$0xff]  ;;  %vm350_vm5 = vcmask 146448   ;;  %s1370_s24 = smov 126  }
  0x7b   : > { %333 = vst.msk [vmem:[#allocation2] sm:$0xff] %vm332_vm1, %v1368_v0  ;;  %334 = vst.msk [vmem:[#allocation2 + $0x8] sm:$0xff] %vm332_vm1, %v1368_v0  ;;  %s1371_s19 = smov 124   ;;  %s1372_s10 = smov 4   ;;  %vm533_vm6 = vcmask 1045504   ;;  %vm563_vm7 = vcmask 1043456  }
  0x7c   : > { %337 = vst.msk [vmem:[#allocation2 + $0x18] sm:$0xff] %vm332_vm1, %v1368_v0  ;;  %338 = vst.msk [vmem:[#allocation2 + $0x20] sm:$0xff] %vm332_vm1, %v1368_v0  ;;  %s1373_s26 = smov 1   ;;  %vm551_vm8 = vcmask 1040384   ;;  %vm577_vm9 = vcmask 1041408   ;;  %vm619_vm10 = vcmask 1046528  }
  0x7d   : > { %328 = vst.msk [vmem:[#allocation2 + $0x10] sm:$0xf] %vm327_vm3, %v1368_v0  ;;  %331 = vst.msk [vmem:[#allocation2 + $0x28] sm:$0xf] %vm327_vm3, %v1368_v0  ;;  %s1076_s9 = sshll.u32 %s1603_s6, 6  ;;  %vm643_vm11 = vcmask 130050  }
  0x7e   : > { %390 = vst.msk [vmem:[#allocation2] sm:$0x3] %vm389_vm2, %v1368_v0  ;;  %391 = vst.msk [vmem:[#allocation2 + $0x18] sm:$0x3] %vm389_vm2, %v1368_v0  ;;  %346 = vrot.lane.b32.xlu0 %v341_v3, %s1369_s18  ;;  %360 = vrot.lane.b32.xlu1 %v1078_v4, %s1369_s18  ;;  %s1858_s4 = scalar_lea.vmem [#allocation9], %s1076_s9  ;;  %vm647_vm12 = vcmask 123904  }
  0x7f   : > { %336 = vst.msk [vmem:[#allocation2 + $0x10] sm:$0xf] %vm335_vm4, %v1368_v0  ;;  %339 = vst.msk [vmem:[#allocation2 + $0x28] sm:$0xf] %vm335_vm4, %v1368_v0  ;;  %vm665_vm13 = vcmask 124928   ;;  %vm645_vm14 = vcmask 130048  }
  0x80   : > { %414 = vst.msk [vmem:[#allocation2 + $0x12] sm:$0x3] %vm389_vm2, %v1368_v0  ;;  %415 = vst.msk [vmem:[#allocation2 + $0x2a] sm:$0x3] %vm389_vm2, %v1368_v0  ;;  %vm662_vm15 = vcmask 130051   ;;  %s1099_s7 = sshll.u32 %s1352_s15, 10 }
  0x81   : > { %s925_s28 = sshll.u32 %s1858_s4, 4  ;;  %s1877_s1 = scalar_lea.hbm %s1933_s3, %s1099_s7  ;;  %s1879_s28 = int_to_ptr.vmem [resolvable:$true] %s925_s28 }
  0x82   : > { %s910_s20 = scalar_lea.sflag [#allocation5], %s1603_s6  ;;  %s1274_s5 = scalar_lea.vmem %s1879_s28, 1024 }
  0x83   : > { %p1275_p0 = scmp.ne.s32.totalorder %s1879_s28, %s1274_s5  ;;  %p1958_p6 = scmp.ne.s32.totalorder %s1947_s25, 0 }
  0x84   : > { %s1374_s15 = smov [#allocation9]  }
  0x85   : > { %p1276_p8 = pnand %p1275_p0, %p1958_p6  ;;  %s1278_s8 = sshll.u32 %s1374_s15, 4  ;;  %s1279_s8 = int_to_ptr.vmem [resolvable:$false] %s1278_s8 }
  0x86   : > { %s1280_s21 = scalar_lea.vmem %s1279_s8, 2048  ;;  %p1281_p12 = scmp.lt.s32.totalorder %s1879_s28, %s1279_s8 }
  0x87   : > { %p1277_p9 = pneg %p1276_p8  ;;  %p1282_p4 = scmp.lt.s32.totalorder %s1280_s21, %s1274_s5 }
  0x89   : > { %p1283_p10 = por %p1282_p4, %p1281_p12 }
  0x8b   : > { %p1284_p13 = pnand %p1283_p10, %p1277_p9 }
  0xec   : > { %v345_v5 = vpop.permute.xlu0 %344  ;;  %v359_v6 = vpop.permute.xlu1 %358 }
  0xed   : > { %351 = vst.msk [vmem:[#allocation2 + $0x2] sm:$0xff] %vm350_vm5, %v345_v5  ;;  %365 = vst.msk [vmem:[#allocation2 + $0x1a] sm:$0xff] %vm350_vm5, %v359_v6 }
  0xf0   : > { %v347_v7 = vpop.permute.xlu0 %346  ;;  %v361_v8 = vpop.permute.xlu1 %360 }
  0xf1   : > { %352 = vst.msk [vmem:[#allocation2 + $0xa] sm:$0xff] %vm350_vm5, %v347_v7  ;;  %366 = vst.msk [vmem:[#allocation2 + $0x22] sm:$0xff] %vm350_vm5, %v361_v8 }
  0xf4   : > { %v1630_v9 = vld [vmem:[#allocation2] sm:$0xff]  ;;  %v1646_v12 = vld [vmem:[#allocation2 + $0x18] sm:$0xff] }
  0xf5   : > { %437 = vrot.lane.b32.xlu0 %v1630_v9, %s1369_s18 }
  0xf8   : > { %v1634_v10 = vld [vmem:[#allocation2 + $0x8] sm:$0xff]  ;;  %v1636_v11 = vld [vmem:[#allocation2 + $0x10] sm:$0xf]  ;;  %v1648_v13 = vld [vmem:[#allocation2 + $0x20] sm:$0xff] }
  0xf9   : > { %439 = vrot.lane.b32.xlu1 %v1634_v10, %s1369_s18  ;;  %441 = vrot.lane.b32.xlu0 %v1636_v11, %s1369_s18  ;;  %v1654_v14 = vld [vmem:[#allocation2 + $0x28] sm:$0xf] }
  0xfd   : > { %467 = vrot.lane.b32.xlu1 %v1630_v9, %s1370_s24  ;;  %469 = vrot.lane.b32.xlu0 %v1634_v10, %s1370_s24 }
 0x101   : > { %688 = vrot.lane.b32.xlu1 %v1646_v12, %s1369_s18  ;;  %690 = vrot.lane.b32.xlu0 %v1648_v13, %s1369_s18 }
 0x105   : > { %692 = vrot.lane.b32.xlu1 %v1654_v14, %s1369_s18  ;;  %718 = vrot.lane.b32.xlu0 %v1646_v12, %s1370_s24 }
 0x109   : > { %720 = vrot.lane.b32.xlu1 %v1648_v13, %s1370_s24  ;;  %497 = vrot.lane.b32.xlu0 %v1630_v9, %s1371_s19 }
 0x10d   : > { %499 = vrot.lane.b32.xlu1 %v1634_v10, %s1371_s19  ;;  %748 = vrot.lane.b32.xlu0 %v1646_v12, %s1371_s19 }
 0x111   : > { %750 = vrot.lane.b32.xlu1 %v1648_v13, %s1371_s19  ;;  %471 = vrot.lane.b32.xlu0 %v1636_v11, %s1370_s24 }
 0x115   : > { %722 = vrot.lane.b32.xlu1 %v1654_v14, %s1370_s24  ;;  %501 = vrot.lane.b32.xlu0 %v1636_v11, %s1371_s19 }
 0x119   : > { %752 = vrot.lane.b32.xlu1 %v1654_v14, %s1371_s19  ;;  %422 = vrot.lane.b32.xlu0 %v1630_v9, %s1372_s10 }
 0x11d   : > { %424 = vrot.lane.b32.xlu1 %v1634_v10, %s1372_s10  ;;  %426 = vrot.lane.b32.xlu0 %v1636_v11, %s1372_s10 }
 0x121   : > { %673 = vrot.lane.b32.xlu1 %v1646_v12, %s1372_s10  ;;  %675 = vrot.lane.b32.xlu0 %v1648_v13, %s1372_s10 }
 0x125   : > { %677 = vrot.lane.b32.xlu1 %v1654_v14, %s1372_s10 }
 0x167   : > { %v438_v15 = vpop.permute.xlu0 %437 }
 0x168   : > { %v446_v16 = vsub.f32 %v1630_v9, %v438_v15 }
 0x16a   : > { %v449_v17 = vmul.f32 0.5, %v446_v16 }
 0x16b   : > { %v440_v18 = vpop.permute.xlu1 %439  ;;  %v442_v19 = vpop.permute.xlu0 %441 }
 0x16c   : > { %v447_v20 = vsub.f32 %v1634_v10, %v440_v18  ;;  %v448_v21 = vsub.f32 %v1636_v11, %v442_v19  ;;  %455 = vrot.lane.b32.xlu0 %v449_v17, %s1373_s26 }
 0x16e   : > { %v450_v22 = vmul.f32 0.5, %v447_v20  ;;  %v451_v23 = vmul.f32 0.5, %v448_v21 }
 0x16f   : > { %v468_v24 = vpop.permute.xlu1 %467  ;;  %v470_v25 = vpop.permute.xlu0 %469 }
 0x170   : > { %v476_v26 = vadd.f32 %v468_v24, %v1630_v9  ;;  %v477_v27 = vadd.f32 %v470_v25, %v1634_v10  ;;  %457 = vrot.lane.b32.xlu1 %v450_v22, %s1373_s26  ;;  %459 = vrot.lane.b32.xlu0 %v451_v23, %s1373_s26 }
 0x172   : > { %v479_v28 = vmul.f32 0.5, %v476_v26  ;;  %v480_v29 = vmul.f32 0.5, %v477_v27 }
 0x173   : > { %v689_v30 = vpop.permute.xlu1 %688  ;;  %v691_v31 = vpop.permute.xlu0 %690 }
 0x174   : > { %v697_v32 = vsub.f32 %v1646_v12, %v689_v30  ;;  %v698_v33 = vsub.f32 %v1648_v13, %v691_v31  ;;  %485 = vrot.lane.b32.xlu1 %v479_v28, %s1373_s26  ;;  %487 = vrot.lane.b32.xlu0 %v480_v29, %s1373_s26 }
 0x176   : > { %v700_v34 = vmul.f32 0.5, %v697_v32  ;;  %v701_v35 = vmul.f32 0.5, %v698_v33 }
 0x177   : > { %v693_v36 = vpop.permute.xlu1 %692  ;;  %v719_v37 = vpop.permute.xlu0 %718 }
 0x178   : > { %v699_v38 = vsub.f32 %v1654_v14, %v693_v36  ;;  %v727_v39 = vadd.f32 %v719_v37, %v1646_v12  ;;  %706 = vrot.lane.b32.xlu1 %v700_v34, %s1373_s26  ;;  %708 = vrot.lane.b32.xlu0 %v701_v35, %s1373_s26 }
 0x17a   : > { %v702_v40 = vmul.f32 0.5, %v699_v38  ;;  %v730_v41 = vmul.f32 0.5, %v727_v39 }
 0x17b   : > { %v721_v42 = vpop.permute.xlu1 %720  ;;  %v498_v43 = vpop.permute.xlu0 %497 }
 0x17c   : > { %v728_v44 = vadd.f32 %v721_v42, %v1648_v13  ;;  %v506_v45 = vadd.f32 %v498_v43, %v1630_v9  ;;  %710 = vrot.lane.b32.xlu1 %v702_v40, %s1373_s26  ;;  %736 = vrot.lane.b32.xlu0 %v730_v41, %s1373_s26 }
 0x17e   : > { %v731_v46 = vmul.f32 0.5, %v728_v44  ;;  %v509_v47 = vmul.f32 0.25, %v506_v45 }
 0x17f   : > { %v500_v48 = vpop.permute.xlu1 %499  ;;  %v749_v49 = vpop.permute.xlu0 %748 }
 0x180   : > { %v507_v50 = vadd.f32 %v500_v48, %v1634_v10  ;;  %v757_v51 = vadd.f32 %v749_v49, %v1646_v12  ;;  %738 = vrot.lane.b32.xlu1 %v731_v46, %s1373_s26  ;;  %515 = vrot.lane.b32.xlu0 %v509_v47, %s1369_s18 }
 0x182   : > { %v510_v52 = vmul.f32 0.25, %v507_v50  ;;  %v760_v53 = vmul.f32 0.25, %v757_v51 }
 0x183   : > { %v751_v54 = vpop.permute.xlu1 %750  ;;  %v472_v55 = vpop.permute.xlu0 %471 }
 0x184   : > { %v758_v56 = vadd.f32 %v751_v54, %v1648_v13  ;;  %v478_v57 = vadd.f32 %v472_v55, %v1636_v11  ;;  %517 = vrot.lane.b32.xlu1 %v510_v52, %s1369_s18  ;;  %766 = vrot.lane.b32.xlu0 %v760_v53, %s1369_s18 }
 0x186   : > { %v761_v58 = vmul.f32 0.25, %v758_v56  ;;  %v481_v59 = vmul.f32 0.5, %v478_v57 }
 0x187   : > { %v723_v60 = vpop.permute.xlu1 %722  ;;  %v502_v61 = vpop.permute.xlu0 %501 }
 0x188   : > { %v729_v62 = vadd.f32 %v723_v60, %v1654_v14  ;;  %v508_v63 = vadd.f32 %v502_v61, %v1636_v11  ;;  %768 = vrot.lane.b32.xlu1 %v761_v58, %s1369_s18  ;;  %489 = vrot.lane.b32.xlu0 %v481_v59, %s1373_s26 }
 0x18a   : > { %v732_v0 = vmul.f32 0.5, %v729_v62  ;;  %v511_v1 = vmul.f32 0.25, %v508_v63 }
 0x18b   : > { %v753_v2 = vpop.permute.xlu1 %752  ;;  %v423_v5 = vpop.permute.xlu0 %422 }
 0x18c   : > { %v759_v3 = vadd.f32 %v753_v2, %v1654_v14  ;;  %740 = vrot.lane.b32.xlu1 %v732_v0, %s1373_s26  ;;  %519 = vrot.lane.b32.xlu0 %v511_v1, %s1369_s18  ;;  %v431_v16 = vsub.f32 %v1630_v9, %v423_v5 }
 0x18e   : > { %v762_v4 = vmul.f32 0.25, %v759_v3  ;;  %v434_v21 = vmul.f32 0.25, %v431_v16 }
 0x18f   : > { %v425_v6 = vpop.permute.xlu1 %424  ;;  %v427_v7 = vpop.permute.xlu0 %426 }
 0x190   : > { %770 = vrot.lane.b32.xlu1 %v762_v4, %s1369_s18  ;;  %v432_v17 = vsub.f32 %v1634_v10, %v425_v6  ;;  %v433_v18 = vsub.f32 %v1636_v11, %v427_v7 }
 0x192   : > { %v435_v22 = vmul.f32 0.25, %v432_v17  ;;  %v436_v23 = vmul.f32 0.25, %v433_v18 }
 0x193   : > { %v674_v8 = vpop.permute.xlu1 %673  ;;  %v676_v15 = vpop.permute.xlu0 %675 }
 0x194   : > { %v682_v29 = vsub.f32 %v1646_v12, %v674_v8  ;;  %v683_v30 = vsub.f32 %v1648_v13, %v676_v15 }
 0x196   : > { %v685_v44 = vmul.f32 0.25, %v682_v29  ;;  %v686_v45 = vmul.f32 0.25, %v683_v30 }
 0x197   : > { %v678_v19 = vpop.permute.xlu1 %677 }
 0x198   : > { %v684_v38 = vsub.f32 %v1654_v14, %v678_v19 }
 0x19a   : > { %v687_v51 = vmul.f32 0.25, %v684_v38 }
 0x1de   : > { %v456_v20 = vpop.permute.xlu0 %455 }
 0x1df   : > { %v464_v24 = vadd.f32 %v456_v20, %v434_v21 }
 0x1e1   : > { %v534_v34 = vrot.slane %v464_v24, 2  ;;  %v564_v37 = vrot.slane %v464_v24, 4  ;;  %v527_v60 = vmul.f32 0.2, %v464_v24 }
 0x1e2   : > { %v458_v25 = vpop.permute.xlu1 %457  ;;  %v460_v26 = vpop.permute.xlu0 %459 }
 0x1e3   : > { %v1723_v27 = vadd.f32 %v458_v25, %v435_v22  ;;  %v1725_v28 = vadd.f32 %v460_v26, %v436_v23 }
 0x1e5   : > { %v535_v31 = vrot.slane %v1723_v27, 2  ;;  %v537_v32 = vrot.slane %v1725_v28, 2  ;;  %v565_v33 = vrot.slane %v1723_v27, 4  ;;  %v567_v48 = vrot.slane %v1725_v28, 4 }
 0x1e6   : > { %v486_v35 = vpop.permute.xlu1 %485  ;;  %v488_v36 = vpop.permute.xlu0 %487 }
 0x1e7   : > { %v538_v39 = vsel %vm533_vm6, %v535_v31, %v537_v32  ;;  %v544_v40 = vadd.f32 %v537_v32, %v1725_v28  ;;  %v536_v41 = vsel %vm533_vm6, %v534_v34, %v535_v31  ;;  %v566_v42 = vsel %vm563_vm7, %v564_v37, %v565_v33 }
 0x1e8   : > { %v543_v43 = vadd.f32 %v538_v39, %v1723_v27  ;;  %v542_v46 = vadd.f32 %v536_v41, %v464_v24  ;;  %v571_v47 = vadd.f32 %v566_v42, %v464_v24  ;;  %v568_v2 = vsel %vm563_vm7, %v565_v33, %v567_v48 }
 0x1e9   : > { %v547_v55 = vmul.f32 0.1, %v544_v40  ;;  %v572_v20 = vadd.f32 %v568_v2, %v1723_v27  ;;  %v494_v24 = vadd.f32 %v486_v35, %v1630_v9  ;;  %v495_v31 = vadd.f32 %v488_v36, %v1634_v10 }
 0x1ea   : > { %v707_v49 = vpop.permute.xlu1 %706  ;;  %v709_v50 = vpop.permute.xlu0 %708  ;;  %v1741_v54 = vmul.f32 0.1, %v542_v46  ;;  %v1743_v56 = vmul.f32 0.05, %v571_v47  ;;  %v1745_v57 = vmul.f32 0.1, %v543_v43 }
 0x1eb   : > { %v715_v52 = vadd.f32 %v707_v49, %v685_v44  ;;  %v1739_v53 = vadd.f32 %v709_v50, %v686_v45  ;;  %v555_v7 = vrot.slane %v547_v55, 7  ;;  %v529_v33 = vmul.f32 0.2, %v1725_v28 }
 0x1ec   : > { %v552_v61 = vrot.slane %v1741_v54, 7  ;;  %v578_v5 = vrot.slane %v1743_v56, 6  ;;  %v553_v16 = vrot.slane %v1745_v57, 7  ;;  %v1776_v34 = vmul.f32 0.05, %v572_v20 }
 0x1ed   : > { %v784_v58 = vrot.slane %v715_v52, 2  ;;  %v785_v59 = vrot.slane %v1739_v53, 2  ;;  %v812_v0 = vrot.slane %v715_v52, 4  ;;  %v813_v1 = vrot.slane %v1739_v53, 4 }
 0x1ee   : > { %v711_v62 = vpop.permute.xlu1 %710  ;;  %v737_v63 = vpop.permute.xlu0 %736  ;;  %v560_v4 = vadd.f32 %v552_v61, %v527_v60  ;;  %v778_v25 = vmul.f32 0.2, %v715_v52  ;;  %v556_v30 = vsel %vm551_vm8, %v553_v16, %v555_v7  ;;  %v579_v45 = vrot.slane %v1776_v34, 6 }
 0x1ef   : > { %v1751_v3 = vadd.f32 %v711_v62, %v687_v51  ;;  %v786_v6 = vsel %vm533_vm6, %v784_v58, %v785_v59  ;;  %v814_v15 = vsel %vm563_vm7, %v812_v0, %v813_v1  ;;  %v745_v40 = vadd.f32 %v737_v63, %v1646_v12 }
 0x1f0   : > { %v792_v8 = vadd.f32 %v786_v6, %v715_v52  ;;  %v584_v18 = vadd.f32 %v578_v5, %v560_v4  ;;  %v819_v19 = vadd.f32 %v814_v15, %v715_v52  ;;  %v562_v42 = vadd.f32 %v556_v30, %v529_v33 }
 0x1f1   : > { %v787_v17 = vrot.slane %v1751_v3, 2  ;;  %v815_v36 = vrot.slane %v1751_v3, 4 }
 0x1f2   : > { %v739_v21 = vpop.permute.xlu1 %738  ;;  %v516_v22 = vpop.permute.xlu0 %515  ;;  %v1763_v23 = vmul.f32 0.1, %v792_v8  ;;  %634 = vrot.lane.b32.xlu0 %v584_v18, %s1371_s19  ;;  %v1768_v29 = vmul.f32 0.05, %v819_v19  ;;  %v586_v52 = vadd.f32 %v579_v45, %v562_v42  ;;  %v554_v42 = vsel %vm551_vm8, %v552_v61, %v553_v16 }
 0x1f3   : > { %v788_v32 = vsel %vm533_vm6, %v785_v59, %v787_v17  ;;  %v1778_v9 = vadd.f32 %v516_v22, %v494_v24  ;;  %v794_v10 = vadd.f32 %v787_v17, %v1751_v3  ;;  %v746_v44 = vadd.f32 %v739_v21, %v1648_v13 }
 0x1f4   : > { %v801_v26 = vrot.slane %v1763_v23, 7  ;;  %v825_v39 = vrot.slane %v1768_v29, 6  ;;  %v793_v43 = vadd.f32 %v788_v32, %v1739_v53  ;;  %v816_v59 = vsel %vm563_vm7, %v813_v1, %v815_v36 }
 0x1f5   : > { %v604_v46 = vrot.slane %v1778_v9, 4  ;;  %v797_v55 = vmul.f32 0.1, %v794_v10  ;;  %v590_v60 = vrot.slane %v1778_v9, 6  ;;  %v528_v1 = vmul.f32 0.2, %v1723_v27 }
 0x1f6   : > { %v518_v35 = vpop.permute.xlu1 %517  ;;  %v767_v37 = vpop.permute.xlu0 %766  ;;  %v809_v38 = vadd.f32 %v801_v26, %v778_v25  ;;  %v1800_v58 = vmul.f32 0.1, %v793_v43  ;;  %v780_v27 = vmul.f32 0.2, %v1751_v3 }
 0x1f7   : > { %v525_v41 = vadd.f32 %v518_v35, %v495_v31  ;;  %v1792_v47 = vadd.f32 %v767_v37, %v745_v40  ;;  %v804_v15 = vrot.slane %v797_v55, 7  ;;  %v610_v24 = vsub.f32 %v1778_v9, %v604_v46 }
 0x1f8   : > { %v831_v28 = vadd.f32 %v825_v39, %v809_v38  ;;  %v802_v17 = vrot.slane %v1800_v58, 7  ;;  %v561_v54 = vadd.f32 %v554_v42, %v528_v1 }
 0x1f9   : > { %v605_v49 = vrot.slane %v525_v41, 4  ;;  %v591_v50 = vrot.slane %v525_v41, 6  ;;  %v851_v2 = vrot.slane %v1792_v47, 4  ;;  %v837_v38 = vrot.slane %v1792_v47, 6 }
 0x1fa   : > { %v769_v12 = vpop.permute.xlu1 %768  ;;  %880 = vrot.lane.b32.xlu0 %v831_v28, %s1371_s19  ;;  %v490_v48 = vpop.permute.xlu0 %489  ;;  %v805_v3 = vsel %vm551_vm8, %v802_v17, %v804_v15  ;;  %v613_v28 = vmul.f32 0.05, %v610_v24 }
 0x1fb   : > { %v1795_v51 = vadd.f32 %v769_v12, %v746_v44  ;;  %v606_v13 = vsel %vm563_vm7, %v604_v46, %v605_v49  ;;  %v496_v62 = vadd.f32 %v490_v48, %v1636_v11  ;;  %v592_v8 = vsel %vm577_vm9, %v590_v60, %v591_v50 }
 0x1fc   : > { %v611_v0 = vsub.f32 %v525_v41, %v606_v13  ;;  %v820_v11 = vadd.f32 %v816_v59, %v1739_v53  ;;  %v599_v31 = vsub.f32 %v525_v41, %v592_v8  ;;  %v598_v13 = vsub.f32 %v1778_v9, %v590_v60 }
 0x1fd   : > { %v852_v63 = vrot.slane %v1795_v51, 4  ;;  %v838_v25 = vrot.slane %v1795_v51, 6  ;;  %v857_v58 = vsub.f32 %v1792_v47, %v851_v2  ;;  %v580_v59 = vsel %vm577_vm9, %v578_v5, %v579_v45 }
 0x1fe   : > { %v741_v4 = vpop.permute.xlu1 %740  ;;  %638 = vrot.lane.b32.xlu0 %v586_v52, %s1371_s19  ;;  %v520_v6 = vpop.permute.xlu0 %519  ;;  %v614_v22 = vmul.f32 0.05, %v611_v0  ;;  %v822_v40 = vmul.f32 0.05, %v820_v11  ;;  %v602_v44 = vmul.f32 0.1, %v599_v31  ;;  %v811_v52 = vadd.f32 %v805_v3, %v780_v27 }
 0x1ff   : > { %v526_v7 = vadd.f32 %v520_v6, %v496_v62  ;;  %v853_v18 = vsel %vm563_vm7, %v851_v2, %v852_v63  ;;  %v747_v19 = vadd.f32 %v741_v4, %v1654_v14  ;;  %v839_v48 = vsel %vm577_vm9, %v837_v38, %v838_v25 }
 0x200   : > { %v858_v37 = vsub.f32 %v1795_v51, %v853_v18  ;;  %v621_v36 = vrot.slane %v614_v22, 1  ;;  %v826_v61 = vrot.slane %v822_v40, 6  ;;  %v846_v16 = vsub.f32 %v1795_v51, %v839_v48 }
 0x201   : > { %v593_v20 = vrot.slane %v526_v7, 6  ;;  %v612_v21 = vsub.f32 %v526_v7, %v605_v49  ;;  %v585_v4 = vadd.f32 %v580_v59, %v561_v54  ;;  %v803_v9 = vsel %vm551_vm8, %v801_v26, %v802_v17 }
 0x202   : > { %v771_v30 = vpop.permute.xlu1 %770  ;;  %v861_v49 = vmul.f32 0.05, %v858_v37  ;;  %v833_v0 = vadd.f32 %v826_v61, %v811_v52  ;;  %v849_v56 = vmul.f32 0.1, %v846_v16  ;;  %v601_v34 = vmul.f32 0.1, %v598_v13 }
 0x203   : > { %v594_v32 = vsel %vm577_vm9, %v591_v50, %v593_v20  ;;  %v615_v33 = vmul.f32 0.05, %v612_v21  ;;  %v777_v35 = vadd.f32 %v771_v30, %v747_v19  ;;  %v779_v5 = vmul.f32 0.2, %v1739_v53 }
 0x204   : > { %v600_v14 = vsub.f32 %v526_v7, %v594_v32  ;;  %v867_v62 = vrot.slane %v861_v49, 1  ;;  %v860_v45 = vmul.f32 0.05, %v857_v58  ;;  %v845_v23 = vsub.f32 %v1792_v47, %v837_v38 }
 0x205   : > { %v623_v10 = vrot.slane %v615_v33, 1  ;;  %v859_v41 = vsub.f32 %v777_v35, %v852_v63  ;;  %v620_v63 = vrot.slane %v613_v28, 1  ;;  %v840_v6 = vrot.slane %v777_v35, 6 }
 0x206   : > { %v603_v43 = vmul.f32 0.1, %v600_v14  ;;  %v810_v2 = vadd.f32 %v803_v9, %v779_v5  ;;  %v827_v26 = vsel %vm577_vm9, %v825_v39, %v826_v61  ;;  %v866_v15 = vrot.slane %v860_v45, 1 }
 0x207   : > { %v862_v46 = vmul.f32 0.05, %v859_v41  ;;  %v624_v12 = vsel %vm619_vm10, %v621_v36, %v623_v10  ;;  %v622_v8 = vsel %vm619_vm10, %v620_v63, %v621_v36  ;;  %v841_v1 = vsel %vm577_vm9, %v838_v25, %v840_v6 }
 0x208   : > { %v629_v50 = vadd.f32 %v624_v12, %v602_v44  ;;  %v630_v57 = vadd.f32 %v623_v10, %v603_v43  ;;  %v628_v60 = vadd.f32 %v622_v8, %v601_v34  ;;  %v847_v17 = vsub.f32 %v777_v35, %v841_v1 }
 0x209   : > { %v869_v55 = vrot.slane %v862_v46, 1  ;;  %v832_v53 = vadd.f32 %v827_v26, %v810_v2  ;;  %v868_v11 = vsel %vm619_vm10, %v866_v15, %v867_v62  ;;  %v848_v18 = vmul.f32 0.1, %v845_v23 }
 0x20a   : > { %654 = vrot.lane.b32.xlu0 %v629_v50, %s1370_s24  ;;  %656 = vrot.lane.b32.xlu1 %v630_v57, %s1370_s24  ;;  %v850_v19 = vmul.f32 0.1, %v847_v17 }
 0x20b   : > { %v870_v7 = vsel %vm619_vm10, %v867_v62, %v869_v55  ;;  %v874_v20 = vadd.f32 %v868_v11, %v848_v18 }
 0x20c   : > { %v875_v51 = vadd.f32 %v870_v7, %v849_v56  ;;  %v876_v21 = vadd.f32 %v869_v55, %v850_v19 }
 0x20e   : > { %884 = vrot.lane.b32.xlu0 %v833_v0, %s1371_s19  ;;  %636 = vrot.lane.b32.xlu1 %v585_v4, %s1371_s19 }
 0x212   : > { %898 = vrot.lane.b32.xlu0 %v875_v51, %s1370_s24  ;;  %652 = vrot.lane.b32.xlu1 %v628_v60, %s1370_s24 }
 0x216   : > { %882 = vrot.lane.b32.xlu1 %v832_v53, %s1371_s19 }
 0x21a   : > { %896 = vrot.lane.b32.xlu1 %v874_v20, %s1370_s24 }
 0x21e   : > { %900 = vrot.lane.b32.xlu1 %v876_v21, %s1370_s24 }
 0x264   : > { %v635_v29 = vpop.permute.xlu0 %634 }
 0x265   : > { %644 = vst.msk [vmem:[%s1858_s4 - $0x2] sm:$0xfc] %vm643_vm11, %v635_v29 }
 0x26c   : > { %v881_v39 = vpop.permute.xlu0 %880 }
 0x26d   : > { %1084 = vst.msk [vmem:[%s1858_s4 + $0x1e] sm:$0xfc] %vm643_vm11, %v881_v39 }
 0x270   : > { %v639_v47 = vpop.permute.xlu0 %638 }
 0x271   : > { %648 = vst.msk [vmem:[%s1858_s4 + $0xe] sm:$0x3] %vm647_vm12, %v639_v47 }
 0x27c   : > { %v657_v22 = vpop.permute.xlu1 %656  ;;  %v655_v24 = vpop.permute.xlu0 %654 }
 0x27d   : > { %1083 = vst.msk [vmem:[%s1858_s4 + $0x1d] sm:$0x7] %vm665_vm13, %v657_v22 }
 0x27e   : > { %1082 = vst.msk [vmem:[%s1858_s4 + $0x15] sm:$0xff] %vm645_vm14, %v655_v24 }
 0x280   : > { %v637_v25 = vpop.permute.xlu1 %636  ;;  %v885_v30 = vpop.permute.xlu0 %884 }
 0x281   : > { %646 = vst.msk [vmem:[%s1858_s4 + $0x6] sm:$0xff] %vm645_vm14, %v637_v25 }
 0x282   : > { %1086 = vst.msk [vmem:[%s1858_s4 + $0x2e] sm:$0x3] %vm647_vm12, %v885_v30 }
 0x284   : > { %v653_v31 = vpop.permute.xlu1 %652  ;;  %v899_v27 = vpop.permute.xlu0 %898 }
 0x285   : > { %1081 = vst.msk [vmem:[%s1858_s4 + $0xd] sm:$0xf8] %vm662_vm15, %v653_v31 }
 0x286   : > { %1088 = vst.msk [vmem:[%s1858_s4 + $0x35] sm:$0xff] %vm645_vm14, %v899_v27 }
 0x288   : > { %v883_v32 = vpop.permute.xlu1 %882 }
 0x289   : > { %1085 = vst.msk [vmem:[%s1858_s4 + $0x26] sm:$0xff] %vm645_vm14, %v883_v32 }
 0x28c   : > { %v897_v33 = vpop.permute.xlu1 %896 }
 0x28d   : > { %1087 = vst.msk [vmem:[%s1858_s4 + $0x2d] sm:$0xf8] %vm662_vm15, %v897_v33 }
 0x290   : > { %v901_v35 = vpop.permute.xlu1 %900 }
 0x291   : > { %1089 = vst.msk [vmem:[%s1858_s4 + $0x3d] sm:$0x7] %vm665_vm13, %v901_v35 }
 0x292   : > { %1287 = shalt.err (!%p1284_p13)
}
 0x293   : > { %s1288_s30 = scalar_lea.hbm %s1877_s1, 1024  ;;  %s1292_s23 = scalar_lea.hbm %s1933_s3, 2048 }
 0x294   : > { %p1289_p11 = scmp.ne.s32.totalorder %s1877_s1, %s1288_s30  ;;  %p1293_p5 = scmp.lt.u32.totalorder %s1877_s1, %s1933_s3 }
 0x295   : > { %p1294_p2 = scmp.lt.u32.totalorder %s1292_s23, %s1288_s30  ;;  %p1296_p0 = scmp.lt.u32.totalorder %s1288_s30, %s1877_s1 }
 0x296   : > { %p1290_p7 = pnand %p1289_p11, %p1958_p6 }
 0x297   : > { %p1295_p1 = por %p1294_p2, %p1293_p5 }
 0x298   : > { %p1291_p3 = pneg %p1290_p7 }
 0x299   : > { %p1297_p8 = por %p1296_p0, %p1295_p1 }
 0x29b   : > { %p1298_p9 = pnand %p1297_p8, %p1291_p3 }
 0x29d   : > { %1301 = shalt.err (!%p1298_p9)
}
 0x29e   : > { %s1375_s19 = smov 128   ;;  %s1376_s10 = smov 8  }
 0x29f   : > { %1107 = dma.vmem_to_hbm [thread:$0]  (%p1958_p6), %s1879_s28, 1024, %s1877_s1, %s910_s20, %s1375_s19, %s1375_s19, %s1376_s10  }
 0x2a0 PF: > { %s940_s26 = sand.u32 1, %s1340_s12   ;;  %p1959_p12 = scmp.ne.s32.totalorder %s1949_s27, 0 }
 0x2a1   : > { %p1960_p4 = scmp.ge.s32.totalorder %s1360_s17, 2  ;;  %s941_s9 = scalar_lea.sflag [#allocation5], %s940_s26 }
 0x2a3   : > { %p1120_p10 = pnand %p1960_p4, %p1959_p12 }
 0x2a5   : > { %1335 = dma.done.wait (!%p1120_p10), %s941_s9, 1024  }
 0x2a6   : > { %1337 = vsyncadd (!%p1120_p10), %s941_s9, 4294966272  ;;  %s22_s17 = sadd.s32 1, %s1360_s17   ;;  %s1961_s4 = sld [smem:[#allocation15_spill]] }
 0x2a7   : > { %p19_p13 = scmp.ge.s32.totalorder %s22_s17, 4   ;;  %s1962_s15 = sld [smem:[#allocation13_spill]] }
 0x2a8   : > { %s1963_s16 = sld [smem:[#allocation14_spill]]  ;;  %s1964_s12 = smov %s1344_s13 }
 0x2a9   : > { %s1965_s13 = smov %s1348_s14  ;;  %21 = sbr.rel (!%p19_p13) target bundleno = 10 (0xa), region = 124 }
 0x2ac   : > { %s1966_s14 = smov %s1961_s4 }
 0x2b0   :  { %946 = vsyncpa [#allocation4], 1 }
 0x2b1   :  { %948 = vsyncpa [#allocation4 + $0x1], 1 }
 0x2b2   :  { %949 = vsyncpa [#allocation7], 1 }
 0x2b3   :  { %951 = vsyncpa [#allocation7 + $0x1], 1 }
 0x2b4   :  { %952 = vsyncpa [#allocation5], 1 }
 0x2b5   :  { %954 = vsyncpa [#allocation5 + $0x1], 1 }

</bundles_post_ra>
